<compile_context>
chip_gen: v7x
topology: tpu7x:2x2x1
jax: 0.10.0
libtpu: 0.0.40
codegen_flags: <defaults>
</compile_context>

<pallas_src>
import jax
import jax.numpy as jnp
from jax.experimental import pallas as pl
from jax.experimental.pallas import tpu as pltpu

INPUT_MEAN = jnp.array([0.2788, 0.2657, 0.2629], dtype=jnp.float32)
INPUT_STD = jnp.array([0.2064, 0.1944, 0.2252], dtype=jnp.float32)

PATCH = 4            # patchify-conv kernel == stride
C1 = 128             # patch-embed conv channels (lane-dense)
C2 = 128             # 1x1 conv channels (lane-dense)
N_WAYPOINTS = 3
HEAD_W = 128         # lane-padded head width (cols 6..127 are zero, sliced in wrapper)
MAX_ROWS = 512       # cap on B_TILE * n_patches (vreg / v7x-VMEM pressure)


def _pick_b_tile(b, n_patches):
    """Largest divisor of b with b_tile*n_patches <= MAX_ROWS, preferring a grid
    of >= 2 steps so ("parallel",) can use both v7x TensorCores."""
    divisors = [t for t in range(1, b + 1)
                if b % t == 0 and t * n_patches <= MAX_ROWS]
    if not divisors:
        return 1
    multi = [t for t in divisors if b // t >= 2]
    return max(multi) if multi else max(divisors)


def _effective_params(params):
    """Fold per-channel input normalization into W1/b1 (exact in f32), cast the
    streamed-matmul weights to bf16, and lane-pad the head to HEAD_W."""
    mean_f = jnp.repeat(INPUT_MEAN, PATCH * PATCH)           # (48,) feature order (c, ph, pw)
    istd_f = jnp.repeat(1.0 / INPUT_STD, PATCH * PATCH)      # (48,)
    w1e = (params["w1"] * istd_f[:, None]).astype(jnp.bfloat16)
    b1e = params["b1"] - (mean_f * istd_f) @ params["w1"]    # (1, C1) f32
    w2e = params["w2"].astype(jnp.bfloat16)
    b2e = params["b2"]
    w3e = jnp.zeros((C2, HEAD_W), jnp.float32).at[:, :N_WAYPOINTS * 2].set(params["w3"])
    b3e = jnp.zeros((1, HEAD_W), jnp.float32).at[:, :N_WAYPOINTS * 2].set(params["b3"])
    return w1e, b1e, w2e, b2e, w3e, b3e


def cnn_planner(image, params):
    b, c, h, w = image.shape
    assert c == 3 and h % PATCH == 0 and w % PATCH == 0
    n_patches = (h // PATCH) * (w // PATCH)
    feat = c * PATCH * PATCH
    b_tile = _pick_b_tile(b, n_patches)
    rows = b_tile * n_patches
    inv_np = 1.0 / n_patches

    w1e, b1e, w2e, b2e, w3e, b3e = _effective_params(params)

    # im2col for the stride-4 patchify conv, done once in XLA (bf16 halves the
    # rewrite traffic).
    # TODO(synk): at real resolutions this is still a full HBM round trip; fuse
    # it into the input DMA (allow_input_fusion) or do the stride-4
    # rearrangement in-kernel once the 6-D permute lowers cleanly in Mosaic.
    x = image.astype(jnp.bfloat16)
    x = x.reshape(b, c, h // PATCH, PATCH, w // PATCH, PATCH)
    x = x.transpose(0, 2, 4, 1, 3, 5)                  # (b, h/P, w/P, c, P, P)
    patches = x.reshape(b * n_patches, feat)

    def kernel(x_ref, w1_ref, b1_ref, w2_ref, b2_ref, w3_ref, b3_ref, o_ref):
        # x_ref: (rows, feat) bf16 patches; normalization folded into W1/b1.
        h1 = jnp.dot(x_ref[...], w1_ref[...],
                     preferred_element_type=jnp.float32) + b1_ref[...]
        h1 = jnp.maximum(h1, 0.0).astype(jnp.bfloat16)
        h2 = jnp.dot(h1, w2_ref[...],
                     preferred_element_type=jnp.float32) + b2_ref[...]
        h2 = jnp.maximum(h2, 0.0)
        # Global average pool: tile-aligned reshape + sublane (XLU) reduction.
        pooled = jnp.sum(h2.reshape(b_tile, n_patches, C2), axis=1) * inv_np
        # Lane-padded head -> dense (b_tile, 128) store, no masked vst.
        o_ref[...] = jnp.dot(pooled, w3_ref[...],
                             preferred_element_type=jnp.float32) + b3_ref[...]

    resident = lambda shape: pl.BlockSpec(shape, lambda i: (0,) * len(shape))

    grid_spec = pltpu.PrefetchScalarGridSpec(
        num_scalar_prefetch=0,
        grid=(b // b_tile,),
        in_specs=[
            pl.BlockSpec((rows, feat), lambda i: (i, 0)),   # streamed patches (bf16)
            resident((feat, C1)),                           # W1 (norm folded, bf16)
            resident((1, C1)),                              # b1 (f32)
            resident((C1, C2)),                             # W2 (bf16)
            resident((1, C2)),                              # b2 (f32)
            resident((C2, HEAD_W)),                         # W3 (lane-padded, f32)
            resident((1, HEAD_W)),                          # b3 (lane-padded, f32)
        ],
        out_specs=pl.BlockSpec((b_tile, HEAD_W), lambda i: (i, 0)),
    )

    flat = pl.pallas_call(
        kernel,
        out_shape=jax.ShapeDtypeStruct((b, HEAD_W), jnp.float32),
        grid_spec=grid_spec,
        compiler_params=pltpu.CompilerParams(
            dimension_semantics=("parallel",)),
    )(patches, w1e, b1e, w2e, b2e, w3e, b3e)

    return flat[:, :N_WAYPOINTS * 2].reshape(b, N_WAYPOINTS, 2)


def cnn_planner_ref(image, params):
    """Pure-JAX (XLA) reference with identical math / dtype flow."""
    b, c, h, w = image.shape
    n_patches = (h // PATCH) * (w // PATCH)
    feat = c * PATCH * PATCH
    w1e, b1e, w2e, b2e, w3e, b3e = _effective_params(params)
    x = image.astype(jnp.bfloat16)
    x = x.reshape(b, c, h // PATCH, PATCH, w // PATCH, PATCH)
    x = x.transpose(0, 2, 4, 1, 3, 5).reshape(b, n_patches, feat)
    h1 = jax.nn.relu(jnp.dot(x, w1e, preferred_element_type=jnp.float32) + b1e)
    h2 = jax.nn.relu(jnp.dot(h1.astype(jnp.bfloat16), w2e,
                             preferred_element_type=jnp.float32) + b2e)
    pooled = h2.sum(axis=1) * (1.0 / n_patches)
    out = jnp.dot(pooled, w3e, precision=jax.lax.Precision.HIGHEST,
                  preferred_element_type=jnp.float32) + b3e
    return out[:, :N_WAYPOINTS * 2].reshape(b, N_WAYPOINTS, 2)


def init_params(key):
    feat = 3 * PATCH * PATCH
    ks = jax.random.split(key, 3)
    s = 0.05
    return {
        "w1": s * jax.random.normal(ks[0], (feat, C1), jnp.float32),
        "b1": jnp.zeros((1, C1), jnp.float32),
        "w2": s * jax.random.normal(ks[1], (C1, C2), jnp.float32),
        "b2": jnp.zeros((1, C2), jnp.float32),
        "w3": s * jax.random.normal(ks[2], (C2, N_WAYPOINTS * 2), jnp.float32),
        "b3": jnp.zeros((1, N_WAYPOINTS * 2), jnp.float32),
    }


if __name__ == "__main__":
    # b_tile=16 -> rows=256 (M fills the v6e/v7x MXU), grid=2 parallel steps
    # (keeps both v7x TensorCores busy via megacore).
    batch, height, width = 32, 16, 16

    key = jax.random.PRNGKey(0)
    k_params, k_img = jax.random.split(key)
    params = init_params(k_params)
    image = jax.random.uniform(k_img, (batch, 3, height, width),
                               jnp.float32)          # vals in [0, 1]

    out = jax.block_until_ready(jax.jit(cnn_planner)(image, params))
    assert out.shape == (batch, N_WAYPOINTS, 2), out.shape
    assert bool(jnp.all(jnp.isfinite(out)))

    ref = jax.block_until_ready(jax.jit(cnn_planner_ref)(image, params))
    err = float(jnp.max(jnp.abs(out - ref)))
    assert err < 1e-3, err

    print("KERNEL_OK")
</pallas_src>

<mosaic_0001>
module attributes {stable_mosaic.version = 11 : i64} {
  func.func @kernel(%arg0: i32, %arg1: memref<256x48xbf16, #tpu.memory_space<vmem>>, %arg2: memref<48x128xbf16, #tpu.memory_space<vmem>>, %arg3: memref<1x128xf32, #tpu.memory_space<vmem>>, %arg4: memref<128x128xbf16, #tpu.memory_space<vmem>>, %arg5: memref<1x128xf32, #tpu.memory_space<vmem>>, %arg6: memref<128x128xf32, #tpu.memory_space<vmem>>, %arg7: memref<1x128xf32, #tpu.memory_space<vmem>>, %arg8: memref<16x128xf32, #tpu.memory_space<vmem>>) attributes {dimension_semantics = [#tpu.dimension_semantics<parallel>], iteration_bounds = array<i64: 2>, scalar_prefetch = 0 : i64, scratch_operands = 0 : i64, tpu.core_type = #tpu.core_type<tc>, window_params = [{transform_indices = @transform_0, window_bounds = array<i64: 256, 48>}, {pipeline_mode = #tpu.pipeline_mode<synchronous>, transform_indices = @transform_1, window_bounds = array<i64: 48, 128>}, {pipeline_mode = #tpu.pipeline_mode<synchronous>, transform_indices = @transform_2, window_bounds = array<i64: 1, 128>}, {pipeline_mode = #tpu.pipeline_mode<synchronous>, transform_indices = @transform_3, window_bounds = array<i64: 128, 128>}, {pipeline_mode = #tpu.pipeline_mode<synchronous>, transform_indices = @transform_4, window_bounds = array<i64: 1, 128>}, {pipeline_mode = #tpu.pipeline_mode<synchronous>, transform_indices = @transform_5, window_bounds = array<i64: 128, 128>}, {pipeline_mode = #tpu.pipeline_mode<synchronous>, transform_indices = @transform_6, window_bounds = array<i64: 1, 128>}, {transform_indices = @transform_7, window_bounds = array<i64: 16, 128>}]} {
    %c0 = arith.constant 0 : index
    %c0_0 = arith.constant 0 : index
    %0 = vector.load %arg1[%c0, %c0_0] : memref<256x48xbf16, #tpu.memory_space<vmem>>, vector<256x48xbf16>
    %c0_1 = arith.constant 0 : index
    %c0_2 = arith.constant 0 : index
    %1 = vector.load %arg2[%c0_1, %c0_2] : memref<48x128xbf16, #tpu.memory_space<vmem>>, vector<48x128xbf16>
    %cst = arith.constant dense<0.000000e+00> : vector<256x128xf32>
    %2 = tpu.matmul %0, %1, %cst {dimension_numbers = #tpu.dot_dimension_numbers<[1], [0], [0], [1], [0, 0, 1, 1], [], []>} : vector<256x48xbf16>, vector<48x128xbf16>, vector<256x128xf32> -> vector<256x128xf32>
    %c0_3 = arith.constant 0 : index
    %c0_4 = arith.constant 0 : index
    %3 = vector.load %arg3[%c0_3, %c0_4] : memref<1x128xf32, #tpu.memory_space<vmem>>, vector<1x128xf32>
    %4 = vector.broadcast %3 : vector<1x128xf32> to vector<256x128xf32>
    %5 = arith.addf %2, %4 : vector<256x128xf32>
    %cst_5 = arith.constant 0.000000e+00 : f32
    %6 = vector.broadcast %cst_5 : f32 to vector<256x128xf32>
    %7 = arith.maximumf %5, %6 : vector<256x128xf32>
    %8 = arith.truncf %7 : vector<256x128xf32> to vector<256x128xbf16>
    %c0_6 = arith.constant 0 : index
    %c0_7 = arith.constant 0 : index
    %9 = vector.load %arg4[%c0_6, %c0_7] : memref<128x128xbf16, #tpu.memory_space<vmem>>, vector<128x128xbf16>
    %cst_8 = arith.constant dense<0.000000e+00> : vector<256x128xf32>
    %10 = tpu.matmul %8, %9, %cst_8 {dimension_numbers = #tpu.dot_dimension_numbers<[1], [0], [0], [1], [0, 0, 1, 1], [], []>} : vector<256x128xbf16>, vector<128x128xbf16>, vector<256x128xf32> -> vector<256x128xf32>
    %c0_9 = arith.constant 0 : index
    %c0_10 = arith.constant 0 : index
    %11 = vector.load %arg5[%c0_9, %c0_10] : memref<1x128xf32, #tpu.memory_space<vmem>>, vector<1x128xf32>
    %12 = vector.broadcast %11 : vector<1x128xf32> to vector<256x128xf32>
    %13 = arith.addf %10, %12 : vector<256x128xf32>
    %cst_11 = arith.constant 0.000000e+00 : f32
    %14 = vector.broadcast %cst_11 : f32 to vector<256x128xf32>
    %15 = arith.maximumf %13, %14 : vector<256x128xf32>
    %16 = vector.shape_cast %15 : vector<256x128xf32> to vector<16x16x128xf32>
    %cst_12 = arith.constant dense<0.000000e+00> : vector<16x128xf32>
    %17 = vector.multi_reduction <add>, %16, %cst_12 [1] : vector<16x16x128xf32> to vector<16x128xf32>
    %cst_13 = arith.constant 6.250000e-02 : f32
    %18 = vector.broadcast %cst_13 : f32 to vector<16x128xf32>
    %19 = arith.mulf %17, %18 : vector<16x128xf32>
    %c0_14 = arith.constant 0 : index
    %c0_15 = arith.constant 0 : index
    %20 = vector.load %arg6[%c0_14, %c0_15] : memref<128x128xf32, #tpu.memory_space<vmem>>, vector<128x128xf32>
    %cst_16 = arith.constant dense<0.000000e+00> : vector<16x128xf32>
    %21 = tpu.matmul %19, %20, %cst_16 {dimension_numbers = #tpu.dot_dimension_numbers<[1], [0], [0], [1], [0, 0, 1, 1], [], []>} : vector<16x128xf32>, vector<128x128xf32>, vector<16x128xf32> -> vector<16x128xf32>
    %c0_17 = arith.constant 0 : index
    %c0_18 = arith.constant 0 : index
    %22 = vector.load %arg7[%c0_17, %c0_18] : memref<1x128xf32, #tpu.memory_space<vmem>>, vector<1x128xf32>
    %23 = vector.broadcast %22 : vector<1x128xf32> to vector<16x128xf32>
    %24 = arith.addf %21, %23 : vector<16x128xf32>
    %c0_19 = arith.constant 0 : index
    %c0_20 = arith.constant 0 : index
    %25 = vector.load %arg8[%c0_19, %c0_20] : memref<16x128xf32, #tpu.memory_space<vmem>>, vector<16x128xf32>
    tpu.vector_store %arg8[%c0_19, %c0_20], %24 {strides = array<i32>} : memref<16x128xf32, #tpu.memory_space<vmem>>, vector<16x128xf32>,
    return
  }
  func.func @transform_0(%arg0: i32) -> (i32, i32) {
    %c0_i32 = arith.constant 0 : i32
    %c0_i32_0 = arith.constant 0 : i32
    return %arg0, %c0_i32 : i32, i32
  }
  func.func @transform_1(%arg0: i32) -> (i32, i32) {
    %c0_i32 = arith.constant 0 : i32
    %c0_i32_0 = arith.constant 0 : i32
    %c0_i32_1 = arith.constant 0 : i32
    return %c0_i32, %c0_i32_0 : i32, i32
  }
  func.func @transform_2(%arg0: i32) -> (i32, i32) {
    %c0_i32 = arith.constant 0 : i32
    %c0_i32_0 = arith.constant 0 : i32
    %c0_i32_1 = arith.constant 0 : i32
    return %c0_i32, %c0_i32_0 : i32, i32
  }
  func.func @transform_3(%arg0: i32) -> (i32, i32) {
    %c0_i32 = arith.constant 0 : i32
    %c0_i32_0 = arith.constant 0 : i32
    %c0_i32_1 = arith.constant 0 : i32
    return %c0_i32, %c0_i32_0 : i32, i32
  }
  func.func @transform_4(%arg0: i32) -> (i32, i32) {
    %c0_i32 = arith.constant 0 : i32
    %c0_i32_0 = arith.constant 0 : i32
    %c0_i32_1 = arith.constant 0 : i32
    return %c0_i32, %c0_i32_0 : i32, i32
  }
  func.func @transform_5(%arg0: i32) -> (i32, i32) {
    %c0_i32 = arith.constant 0 : i32
    %c0_i32_0 = arith.constant 0 : i32
    %c0_i32_1 = arith.constant 0 : i32
    return %c0_i32, %c0_i32_0 : i32, i32
  }
  func.func @transform_6(%arg0: i32) -> (i32, i32) {
    %c0_i32 = arith.constant 0 : i32
    %c0_i32_0 = arith.constant 0 : i32
    %c0_i32_1 = arith.constant 0 : i32
    return %c0_i32, %c0_i32_0 : i32, i32
  }
  func.func @transform_7(%arg0: i32) -> (i32, i32) {
    %c0_i32 = arith.constant 0 : i32
    %c0_i32_0 = arith.constant 0 : i32
    return %arg0, %c0_i32 : i32, i32
  }
}

</mosaic_0001>

<bundles_post_ra>
// kernel: mul.9
= control target key start
LH: loop header
LB: loop body
LE: loop exit
PB: predicated region body
PF: predicated region fallthrough
CT: control target
= control target key end

     0   :  { %s34_s0 = inlined_call_operand.vmem [shape: f32[48], index: 0, kind: input, shape index: {}]   ;;  %s35_s1 = inlined_call_operand.vmem [shape: f32[48], index: 1, kind: input, shape index: {}]   ;;  %s36_s2 = inlined_call_operand.vmem [shape: f32[48], index: 2, kind: output, shape index: {}]  }
   0x1   :  { %v3_v0 = vld [vmem:[%s34_s0] sm:$0x1] }
   0x2   :  { %v4_v1 = vld [vmem:[%s35_s1] sm:$0x1] }
   0x3   :  { %v7_v2 = vmul.f32 %v4_v1, %v3_v0 }
   0x5   :  { %9 = vst [vmem:[%s36_s2] sm:$0x1] %v7_v2 }

// kernel: cnn_planner.1
= control target key start
LH: loop header
LB: loop body
LE: loop exit
PB: predicated region body
PF: predicated region fallthrough
CT: control target
= control target key end

     0   :  { %s1625_s24 = smov 0   ;;  %s1852_s0 = inlined_call_operand.vmem [shape: bf16[512,48], index: 0, kind: input, shape index: {}]   ;;  %s1853_s1 = inlined_call_operand.vmem [shape: bf16[48,128], index: 1, kind: input, shape index: {}]   ;;  %s1854_s2 = inlined_call_operand.vmem [shape: f32[1,128], index: 2, kind: input, shape index: {}]   ;;  %s1855_s3 = inlined_call_operand.vmem [shape: bf16[128,128], index: 3, kind: input, shape index: {}]   ;;  %s1856_s4 = inlined_call_operand.vmem [shape: f32[1,128], index: 4, kind: input, shape index: {}]   ;;  %s1857_s5 = inlined_call_operand.vmem [shape: f32[128,128], index: 5, kind: input, shape index: {}]   ;;  %s1858_s6 = inlined_call_operand.vmem [shape: f32[1,128], index: 6, kind: input, shape index: {}]   ;;  %s1859_s7 = inlined_call_operand.vmem [shape: f32[32,128], index: 7, kind: output, shape index: {}]  }
   0x1 LB: > { %s1271_s25 = sadd.s32 4294967295, %s1583_s24   ;;  %p1275_p0 = scmp.ge.s32.totalorder %s1583_s24, 1  ;;  %s1583_s24 = sphi %s1625_s24, %s17_s24  }
   0x2   : > { %p238_p1 = scmp.lt.s32.totalorder %s1583_s24, 3 }
   0x4   : > { %p239_p2 = pnand %p1275_p0, %p238_p1 }
   0x5   : > { %v1550_v0 = vld [vmem:[%s1853_s1] sm:$0xff] (!%p239_p2)   ;;  %s1276_s28 = sshll.u32 (!%p239_p2), %s1271_s25, 5  ;;  %v1551_v1 = vld [vmem:[%s1853_s1 + $0x8] sm:$0xff] (!%p239_p2)   ;;  %v1552_v2 = vld [vmem:[%s1853_s1 + $0x10] sm:$0xff] (!%p239_p2)   ;;  %vm426_vm0 = vcmask (!%p239_p2), 392192   ;;  %vm1115_vm1 = vcmask (!%p239_p2), 1041409  }
   0x6   : > { %242 = sbr.rel (%p239_p2) target bundleno = 749 (0x2ed), region = 48  ;;  %p271_p3 = scmp.lt.s32.totalorder (!%p239_p2), %s1276_s28, 63  ;;  %1389 = vmatprep.subr.bf16.mxu0 (!%p239_p2), %v1550_v0  ;;  %v1569_v3 = vld [vmem:[%s1855_s3] sm:$0xff] (!%p239_p2)   ;;  %v1570_v4 = vld [vmem:[%s1855_s3 + $0x8] sm:$0xff] (!%p239_p2)   ;;  %v1571_v5 = vld [vmem:[%s1855_s3 + $0x10] sm:$0xff] (!%p239_p2)   ;;  %vm1117_vm2 = vcmask (!%p239_p2), 1042434  }
   0x7   : > { %1390 = vmatpush3.bf16.msra.mxu0 (!%p239_p2), %v1550_v0  ;;  %1427 = vmatprep.subr.bf16.mxu1 (!%p239_p2), %v1569_v3  ;;  %v1572_v7 = vld [vmem:[%s1855_s3 + $0x18] sm:$0xff] (!%p239_p2)   ;;  %v1573_v12 = vld [vmem:[%s1855_s3 + $0x20] sm:$0xff] (!%p239_p2)   ;;  %v1574_v13 = vld [vmem:[%s1855_s3 + $0x28] sm:$0xff] (!%p239_p2)   ;;  %vm1119_vm3 = vcmask (!%p239_p2), 1043459   ;;  %vm1121_vm4 = vcmask (!%p239_p2), 1044484   ;;  %vm1123_vm5 = vcmask (!%p239_p2), 1045509  }
   0x8   : > { %1391 = vmatprep.subr.bf16.mxu0 (!%p239_p2), %v1551_v1  ;;  %1428 = vmatpush3.bf16.msra.mxu1 (!%p239_p2), %v1569_v3  ;;  %v1575_v25 = vld [vmem:[%s1855_s3 + $0x30] sm:$0xff] (!%p239_p2)   ;;  %v1576_v26 = vld [vmem:[%s1855_s3 + $0x38] sm:$0xff] (!%p239_p2)   ;;  %v1708_v27 = vld [vmem:[%s1854_s2] ss:$0 sm:$0xff] (!%p239_p2)  ;;  %vm1125_vm6 = vcmask (!%p239_p2), 1046534   ;;  %vm1127_vm7 = vcmask (!%p239_p2), 1047559  }
   0x9   : > { %1429 = vmatprep.subr.bf16.mxu1 (!%p239_p2), %v1570_v4  ;;  %s1278_s26 = sshll.u32 (!%p239_p2), %s1271_s25, 1 }
   0xa   : > { %p277_p4 = scmp.lt.s32.totalorder (!%p239_p2), %s1278_s26, 3 }
   0xb   : > { %1392 = vmatpush3.bf16.msra.mxu0 (!%p239_p2), %v1551_v1 }
   0xc   : > { %1393 = vmatprep.subr.bf16.mxu0 (!%p239_p2), %v1552_v2  ;;  %1430 = vmatpush3.bf16.msra.mxu1 (!%p239_p2), %v1570_v4 }
   0xd   : > { %s1861_s28 = smov (!%p271_p3, %s1276_s28), 63  ;;  %1431 = vmatprep.subr.bf16.mxu1 %v1571_v5  ;;  %s1863_s26 = smov (!%p277_p4, %s1278_s26), 3 }
   0xe   : > { %s1277_s14 = sshll.u32 %s1861_s28, 2  ;;  %s1279_s27 = sshll.u32 %s1863_s26, 3 }
   0xf   : > { %s1653_s17 = scalar_lea.vmem %s1852_s0, %s1277_s14  ;;  %1394 = vmatpush3.bf16.msra.mxu0 %v1552_v2  ;;  %s280_s9 = scalar_lea.vmem %s1859_s7, %s1279_s27 }
  0x10   : > { %v1553_v6 = vld [vmem:[%s1653_s17] sm:$0xff]   ;;  %v1554_v8 = vld [vmem:[%s1653_s17 + $0x8] sm:$0xff]   ;;  %v1555_v9 = vld [vmem:[%s1653_s17 + $0x10] sm:$0xff]   ;;  %1432 = vmatpush3.bf16.msra.mxu1 %v1571_v5 }
  0x11   : > { %1395 = vmatprep.mubr.msk.bf16.mxu0 %vm426_vm0, %v1553_v6  ;;  %1433 = vmatprep.subr.bf16.mxu1 %v1572_v7  ;;  %v1556_v10 = vld [vmem:[%s1653_s17 + $0x18] sm:$0xff]   ;;  %v1557_v11 = vld [vmem:[%s1653_s17 + $0x20] sm:$0xff]   ;;  %v1558_v14 = vld [vmem:[%s1653_s17 + $0x28] sm:$0xff]  }
  0x12   : > { %1396 = vmatmul.mubr.msk.bf16.vlgmr.msra.gmra.mrb[0].mxu0 %vm426_vm0, %v1554_v8  ;;  %v1559_v15 = vld [vmem:[%s1653_s17 + $0x30] sm:$0xff]   ;;  %v1560_v16 = vld [vmem:[%s1653_s17 + $0x38] sm:$0xff]   ;;  %v1561_v17 = vld [vmem:[%s1653_s17 + $0x40] sm:$0xff]  }
  0x13   : > { %1399 = vmatprep.mubr.msk.bf16.mxu0 %vm426_vm0, %v1555_v9  ;;  %v1562_v18 = vld [vmem:[%s1653_s17 + $0x48] sm:$0xff]   ;;  %v1563_v19 = vld [vmem:[%s1653_s17 + $0x50] sm:$0xff]   ;;  %v1564_v20 = vld [vmem:[%s1653_s17 + $0x58] sm:$0xff]  }
  0x14   : > { %1434 = vmatpush3.bf16.msra.mxu1 %v1572_v7  ;;  %v1565_v21 = vld [vmem:[%s1653_s17 + $0x60] sm:$0xff]   ;;  %v1566_v22 = vld [vmem:[%s1653_s17 + $0x68] sm:$0xff]   ;;  %v1567_v23 = vld [vmem:[%s1653_s17 + $0x70] sm:$0xff]  }
  0x15   : > { %1435 = vmatprep.subr.bf16.mxu1 %v1573_v12  ;;  %v1568_v24 = vld [vmem:[%s1653_s17 + $0x78] sm:$0xff]  }
  0x18   : > { %1436 = vmatpush3.bf16.msra.mxu1 %v1573_v12 }
  0x19   : > { %1437 = vmatprep.subr.bf16.mxu1 %v1574_v13 }
  0x1a   : > { %1400 = vmatmul.mubr.msk.bf16.gmra.mrb[4].mxu0 %vm426_vm0, %v1556_v10 }
  0x1b   : > { %1403 = vmatprep.mubr.msk.bf16.mxu0 %vm426_vm0, %v1557_v11 }
  0x1c   : > { %1438 = vmatpush3.bf16.msra.mxu1 %v1574_v13 }
  0x1d   : > { %1439 = vmatprep.subr.bf16.mxu1 %v1575_v25 }
  0x20   : > { %1440 = vmatpush3.bf16.msra.mxu1 %v1575_v25 }
  0x21   : > { %1441 = vmatprep.subr.bf16.mxu1 %v1576_v26 }
  0x22   : > { %1404 = vmatmul.mubr.msk.bf16.gmra.mrb[8].mxu0 %vm426_vm0, %v1558_v14 }
  0x23   : > { %1407 = vmatprep.mubr.msk.bf16.mxu0 %vm426_vm0, %v1559_v15 }
  0x24   : > { %1442 = vmatpush3.bf16.msra.mxu1 %v1576_v26 }
  0x2a   : > { %1408 = vmatmul.mubr.msk.bf16.gmra.mrb[12].mxu0 %vm426_vm0, %v1560_v16 }
  0x2b   : > { %1411 = vmatprep.mubr.msk.bf16.mxu0 %vm426_vm0, %v1561_v17 }
  0x32   : > { %1412 = vmatmul.mubr.msk.bf16.gmra.mrb[16].mxu0 %vm426_vm0, %v1562_v18 }
  0x33   : > { %1415 = vmatprep.mubr.msk.bf16.mxu0 %vm426_vm0, %v1563_v19 }
  0x3a   : > { %1416 = vmatmul.mubr.msk.bf16.gmra.mrb[20].mxu0 %vm426_vm0, %v1564_v20 }
  0x3b   : > { %1419 = vmatprep.mubr.msk.bf16.mxu0 %vm426_vm0, %v1565_v21 }
  0x42   : > { %1420 = vmatmul.mubr.msk.bf16.gmra.mrb[24].mxu0 %vm426_vm0, %v1566_v22 }
  0x43   : > { %1423 = vmatprep.mubr.msk.bf16.mxu0 %vm426_vm0, %v1567_v23 }
  0x4a   : > { %1424 = vmatmul.mubr.msk.bf16.gmra.mrb[28].mxu0 %vm426_vm0, %v1568_v24 }
  0xe5   : > { %v1397_v28 = vpop.f32.mrb[0].mxu0 }
  0xe6   : > { %v518_v29 = vadd.f32 %v1397_v28, %v1708_v27  ;;  %v509_v30 = vpop.f32.mrb[1].mxu0 }
  0xe7   : > { %v510_v31 = vadd.f32 %v1708_v27, %v509_v30  ;;  %v1398_v32 = vpop.f32.mrb[2].mxu0 }
  0xe8   : > { %v521_v33 = vadd.f32 %v1398_v32, %v1708_v27  ;;  %v512_v34 = vpop.f32.mrb[3].mxu0  ;;  %v638_v36 = vmax.f32 %v518_v29, 0.0 }
  0xe9   : > { %v513_v35 = vadd.f32 %v1708_v27, %v512_v34  ;;  %v636_v38 = vmax.f32 %v510_v31, 0.0 }
  0xea   : > { %v639_v37 = vmax.f32 %v521_v33, 0.0 }
  0xeb   : > { %v637_v39 = vmax.f32 %v513_v35, 0.0 }
  0xec   : > { %v669_v40 = vpack.c.bf16 %v639_v37, %v638_v36 }
  0xed   : > { %v1401_v41 = vpop.f32.mrb[4].mxu0  ;;  %v668_v42 = vpack.c.bf16 %v637_v39, %v636_v38 }
  0xee   : > { %v534_v43 = vadd.f32 %v1401_v41, %v1708_v27  ;;  %v525_v44 = vpop.f32.mrb[5].mxu0 }
  0xef   : > { %v526_v45 = vadd.f32 %v1708_v27, %v525_v44  ;;  %v1402_v46 = vpop.f32.mrb[6].mxu0  ;;  %1443 = vmatprep.mubr.bf16.mxu1 %v668_v42 }
  0xf0   : > { %v537_v47 = vadd.f32 %v1402_v46, %v1708_v27  ;;  %v528_v48 = vpop.f32.mrb[7].mxu0  ;;  %1444 = vmatmul.mubr.bf16.vlgmr.msra.gmra.mrb[0].mxu1 %v669_v40  ;;  %v642_v50 = vmax.f32 %v534_v43, 0.0 }
  0xf1   : > { %v529_v49 = vadd.f32 %v1708_v27, %v528_v48  ;;  %v640_v52 = vmax.f32 %v526_v45, 0.0 }
  0xf2   : > { %v643_v51 = vmax.f32 %v537_v47, 0.0 }
  0xf3   : > { %v641_v53 = vmax.f32 %v529_v49, 0.0 }
  0xf4   : > { %v671_v54 = vpack.c.bf16 %v643_v51, %v642_v50 }
  0xf5   : > { %v670_v55 = vpack.c.bf16 %v641_v53, %v640_v52  ;;  %v1405_v56 = vpop.f32.mrb[8].mxu0 }
  0xf6   : > { %v550_v57 = vadd.f32 %v1405_v56, %v1708_v27  ;;  %v541_v58 = vpop.f32.mrb[9].mxu0 }
  0xf7   : > { %v542_v59 = vadd.f32 %v1708_v27, %v541_v58  ;;  %v1406_v60 = vpop.f32.mrb[10].mxu0  ;;  %1447 = vmatprep.mubr.bf16.mxu1 %v670_v55 }
  0xf8   : > { %v553_v61 = vadd.f32 %v1406_v60, %v1708_v27  ;;  %v544_v62 = vpop.f32.mrb[11].mxu0  ;;  %1448 = vmatmul.mubr.bf16.gmra.mrb[4].mxu1 %v671_v54  ;;  %v646_v0 = vmax.f32 %v550_v57, 0.0 }
  0xf9   : > { %v545_v63 = vadd.f32 %v1708_v27, %v544_v62  ;;  %v644_v2 = vmax.f32 %v542_v59, 0.0 }
  0xfa   : > { %v647_v1 = vmax.f32 %v553_v61, 0.0 }
  0xfb   : > { %v645_v3 = vmax.f32 %v545_v63, 0.0 }
  0xfc   : > { %v673_v4 = vpack.c.bf16 %v647_v1, %v646_v0 }
  0xfd   : > { %v672_v5 = vpack.c.bf16 %v645_v3, %v644_v2  ;;  %v1409_v6 = vpop.f32.mrb[12].mxu0 }
  0xfe   : > { %v566_v7 = vadd.f32 %v1409_v6, %v1708_v27  ;;  %v557_v8 = vpop.f32.mrb[13].mxu0 }
  0xff   : > { %v558_v9 = vadd.f32 %v1708_v27, %v557_v8  ;;  %v1410_v10 = vpop.f32.mrb[14].mxu0  ;;  %1451 = vmatprep.mubr.bf16.mxu1 %v672_v5 }
 0x100   : > { %v569_v11 = vadd.f32 %v1410_v10, %v1708_v27  ;;  %v560_v12 = vpop.f32.mrb[15].mxu0  ;;  %1452 = vmatmul.mubr.bf16.gmra.mrb[8].mxu1 %v673_v4  ;;  %v650_v14 = vmax.f32 %v566_v7, 0.0 }
 0x101   : > { %v561_v13 = vadd.f32 %v1708_v27, %v560_v12  ;;  %v648_v16 = vmax.f32 %v558_v9, 0.0 }
 0x102   : > { %v651_v15 = vmax.f32 %v569_v11, 0.0 }
 0x103   : > { %v649_v17 = vmax.f32 %v561_v13, 0.0  ;;  %v1076_v13 = vld [vmem:[%s1857_s5] sm:$0xff] }
 0x104   : > { %v675_v18 = vpack.c.bf16 %v651_v15, %v650_v14  ;;  %v1077_v14 = vld [vmem:[%s1857_s5 + $0x8] sm:$0xff] }
 0x105   : > { %v674_v19 = vpack.c.bf16 %v649_v17, %v648_v16  ;;  %v1413_v20 = vpop.f32.mrb[16].mxu0  ;;  %v1510_v15 = vpack.c.bf16 %v1077_v14, %v1076_v13  ;;  %v1079_v16 = vld [vmem:[%s1857_s5 + $0x18] sm:$0xff] }
 0x106   : > { %v582_v21 = vadd.f32 %v1413_v20, %v1708_v27  ;;  %v573_v22 = vpop.f32.mrb[17].mxu0 }
 0x107   : > { %v574_v23 = vadd.f32 %v1708_v27, %v573_v22  ;;  %v1414_v24 = vpop.f32.mrb[18].mxu0  ;;  %1455 = vmatprep.mubr.bf16.mxu1 %v674_v19  ;;  %1511 = vmatprep.subr.bf16.mxu0 %v1510_v15  ;;  %v1081_v19 = vld [vmem:[%s1857_s5 + $0x28] sm:$0xff]  ;;  %v1083_v22 = vld [vmem:[%s1857_s5 + $0x38] sm:$0xff] }
 0x108   : > { %v585_v25 = vadd.f32 %v1414_v24, %v1708_v27  ;;  %v576_v26 = vpop.f32.mrb[19].mxu0  ;;  %1456 = vmatmul.mubr.bf16.gmra.mrb[12].mxu1 %v675_v18  ;;  %v654_v29 = vmax.f32 %v582_v21, 0.0  ;;  %1513 = vmatpush3.bf16.msra.mxu0 %v1510_v15  ;;  %v1080_v18 = vld [vmem:[%s1857_s5 + $0x20] sm:$0xff]  ;;  %v1082_v21 = vld [vmem:[%s1857_s5 + $0x30] sm:$0xff] }
 0x109   : > { %v577_v28 = vadd.f32 %v1708_v27, %v576_v26  ;;  %v652_v31 = vmax.f32 %v574_v23, 0.0  ;;  %v1518_v20 = vpack.c.bf16 %v1081_v19, %v1080_v18  ;;  %v1522_v23 = vpack.c.bf16 %v1083_v22, %v1082_v21  ;;  %v1084_v24 = vld [vmem:[%s1857_s5 + $0x40] sm:$0xff] }
 0x10a   : > { %v655_v30 = vmax.f32 %v585_v25, 0.0  ;;  %v1085_v25 = vld [vmem:[%s1857_s5 + $0x48] sm:$0xff] }
 0x10b   : > { %v653_v32 = vmax.f32 %v577_v28, 0.0  ;;  %v1526_v26 = vpack.c.bf16 %v1085_v25, %v1084_v24  ;;  %v1086_v28 = vld [vmem:[%s1857_s5 + $0x50] sm:$0xff] }
 0x10c   : > { %v677_v33 = vpack.c.bf16 %v655_v30, %v654_v29  ;;  %v1087_v29 = vld [vmem:[%s1857_s5 + $0x58] sm:$0xff] }
 0x10d   : > { %v676_v34 = vpack.c.bf16 %v653_v32, %v652_v31  ;;  %v1417_v35 = vpop.f32.mrb[20].mxu0  ;;  %v1530_v30 = vpack.c.bf16 %v1087_v29, %v1086_v28  ;;  %v1088_v31 = vld [vmem:[%s1857_s5 + $0x60] sm:$0xff]  ;;  %v1089_v32 = vld [vmem:[%s1857_s5 + $0x68] sm:$0xff] }
 0x10e   : > { %v598_v36 = vadd.f32 %v1417_v35, %v1708_v27  ;;  %v589_v37 = vpop.f32.mrb[21].mxu0  ;;  %v1091_v35 = vld [vmem:[%s1857_s5 + $0x78] sm:$0xff] }
 0x10f   : > { %v590_v38 = vadd.f32 %v1708_v27, %v589_v37  ;;  %v1418_v39 = vpop.f32.mrb[22].mxu0  ;;  %1459 = vmatprep.mubr.bf16.mxu1 %v676_v34  ;;  %v1090_v34 = vld [vmem:[%s1857_s5 + $0x70] sm:$0xff]  ;;  %v1793_v37 = vld [vmem:[%s1856_s4] ss:$0 sm:$0xff] }
 0x110   : > { %v601_v40 = vadd.f32 %v1418_v39, %v1708_v27  ;;  %v592_v41 = vpop.f32.mrb[23].mxu0  ;;  %1460 = vmatmul.mubr.bf16.gmra.mrb[16].mxu1 %v677_v33  ;;  %v658_v43 = vmax.f32 %v598_v36, 0.0  ;;  %v1534_v33 = vpack.c.bf16 %v1089_v32, %v1088_v31  ;;  %v1538_v36 = vpack.c.bf16 %v1091_v35, %v1090_v34 }
 0x111   : > { %v593_v42 = vadd.f32 %v1708_v27, %v592_v41  ;;  %v656_v45 = vmax.f32 %v590_v38, 0.0 }
 0x112   : > { %v659_v44 = vmax.f32 %v601_v40, 0.0 }
 0x113   : > { %v657_v46 = vmax.f32 %v593_v42, 0.0 }
 0x114   : > { %v679_v47 = vpack.c.bf16 %v659_v44, %v658_v43 }
 0x115   : > { %v678_v48 = vpack.c.bf16 %v657_v46, %v656_v45  ;;  %v1421_v49 = vpop.f32.mrb[24].mxu0 }
 0x116   : > { %v614_v50 = vadd.f32 %v1421_v49, %v1708_v27  ;;  %v605_v51 = vpop.f32.mrb[25].mxu0 }
 0x117   : > { %v606_v52 = vadd.f32 %v1708_v27, %v605_v51  ;;  %v1422_v53 = vpop.f32.mrb[26].mxu0  ;;  %1463 = vmatprep.mubr.bf16.mxu1 %v678_v48 }
 0x118   : > { %v617_v54 = vadd.f32 %v1422_v53, %v1708_v27  ;;  %v608_v55 = vpop.f32.mrb[27].mxu0  ;;  %1464 = vmatmul.mubr.bf16.gmra.mrb[20].mxu1 %v679_v47  ;;  %v662_v57 = vmax.f32 %v614_v50, 0.0 }
 0x119   : > { %v609_v56 = vadd.f32 %v1708_v27, %v608_v55  ;;  %v660_v59 = vmax.f32 %v606_v52, 0.0 }
 0x11a   : > { %v663_v58 = vmax.f32 %v617_v54, 0.0 }
 0x11b   : > { %v661_v60 = vmax.f32 %v609_v56, 0.0 }
 0x11c   : > { %v681_v61 = vpack.c.bf16 %v663_v58, %v662_v57 }
 0x11d   : > { %v680_v62 = vpack.c.bf16 %v661_v60, %v660_v59  ;;  %v1425_v63 = vpop.f32.mrb[28].mxu0 }
 0x11e   : > { %v630_v0 = vadd.f32 %v1425_v63, %v1708_v27  ;;  %v621_v1 = vpop.f32.mrb[29].mxu0 }
 0x11f   : > { %v622_v2 = vadd.f32 %v1708_v27, %v621_v1  ;;  %v1426_v3 = vpop.f32.mrb[30].mxu0  ;;  %1467 = vmatprep.mubr.bf16.mxu1 %v680_v62 }
 0x120   : > { %v633_v4 = vadd.f32 %v1426_v3, %v1708_v27  ;;  %v624_v5 = vpop.f32.mrb[31].mxu0  ;;  %1468 = vmatmul.mubr.bf16.gmra.mrb[24].mxu1 %v681_v61  ;;  %v666_v7 = vmax.f32 %v630_v0, 0.0 }
 0x121   : > { %v625_v6 = vadd.f32 %v1708_v27, %v624_v5  ;;  %v664_v9 = vmax.f32 %v622_v2, 0.0  ;;  %v1078_v27 = vld [vmem:[%s1857_s5 + $0x10] sm:$0xff] }
 0x122   : > { %v667_v8 = vmax.f32 %v633_v4, 0.0  ;;  %v1514_v17 = vpack.c.bf16 %v1079_v16, %v1078_v27 }
 0x123   : > { %v665_v10 = vmax.f32 %v625_v6, 0.0 }
 0x124   : > { %v683_v11 = vpack.c.bf16 %v667_v8, %v666_v7  ;;  %1515 = vmatprep.subr.bf16.mxu0 %v1514_v17 }
 0x125   : > { %v682_v12 = vpack.c.bf16 %v665_v10, %v664_v9  ;;  %1517 = vmatpush3.bf16.msra.mxu0 %v1514_v17 }
 0x126   : > { %1519 = vmatprep.subr.bf16.mxu0 %v1518_v20 }
 0x127   : > { %1471 = vmatprep.mubr.bf16.mxu1 %v682_v12 }
 0x128   : > { %1472 = vmatmul.mubr.bf16.gmra.mrb[28].mxu1 %v683_v11 }
 0x129   : > { %1521 = vmatpush3.bf16.msra.mxu0 %v1518_v20 }
 0x12a   : > { %1523 = vmatprep.subr.bf16.mxu0 %v1522_v23 }
 0x12d   : > { %1525 = vmatpush3.bf16.msra.mxu0 %v1522_v23 }
 0x12e   : > { %1527 = vmatprep.subr.bf16.mxu0 %v1526_v26 }
 0x131   : > { %1529 = vmatpush3.bf16.msra.mxu0 %v1526_v26 }
 0x132   : > { %1531 = vmatprep.subr.bf16.mxu0 %v1530_v30 }
 0x135   : > { %1533 = vmatpush3.bf16.msra.mxu0 %v1530_v30 }
 0x136   : > { %1535 = vmatprep.subr.bf16.mxu0 %v1534_v33 }
 0x139   : > { %1537 = vmatpush3.bf16.msra.mxu0 %v1534_v33 }
 0x13a   : > { %1539 = vmatprep.subr.bf16.mxu0 %v1538_v36 }
 0x13d   : > { %1541 = vmatpush3.bf16.msra.mxu0 %v1538_v36 }
 0x1c3   : > { %v1445_v38 = vpop.f32.mrb[0].mxu1 }
 0x1c4   : > { %v798_v39 = vadd.f32 %v1445_v38, %v1793_v37  ;;  %v789_v40 = vpop.f32.mrb[1].mxu1 }
 0x1c5   : > { %v790_v41 = vadd.f32 %v1793_v37, %v789_v40  ;;  %v1446_v42 = vpop.f32.mrb[2].mxu1 }
 0x1c6   : > { %v801_v43 = vadd.f32 %v1446_v42, %v1793_v37  ;;  %v792_v44 = vpop.f32.mrb[3].mxu1  ;;  %v918_v46 = vmax.f32 %v798_v39, 0.0 }
 0x1c7   : > { %v793_v45 = vadd.f32 %v1793_v37, %v792_v44  ;;  %v916_v48 = vmax.f32 %v790_v41, 0.0 }
 0x1c8   : > { %v919_v47 = vmax.f32 %v801_v43, 0.0 }
 0x1c9   : > { %v917_v49 = vmax.f32 %v793_v45, 0.0 }
 0x1ca   : > { %v955_v50 = vadd.f32 %v919_v47, %v918_v46 }
 0x1cb   : > { %v948_v51 = vadd.f32 %v917_v49, %v916_v48  ;;  %v1449_v52 = vpop.f32.mrb[4].mxu1 }
 0x1cc   : > { %v956_v53 = vrot.slane %v955_v50, 4  ;;  %v814_v54 = vadd.f32 %v1449_v52, %v1793_v37  ;;  %v805_v55 = vpop.f32.mrb[5].mxu1 }
 0x1cd   : > { %v949_v56 = vrot.slane %v948_v51, 4  ;;  %v806_v57 = vadd.f32 %v1793_v37, %v805_v55  ;;  %v1450_v58 = vpop.f32.mrb[6].mxu1 }
 0x1ce   : > { %v957_v59 = vadd.f32 %v956_v53, %v955_v50  ;;  %v817_v60 = vadd.f32 %v1450_v58, %v1793_v37  ;;  %v808_v61 = vpop.f32.mrb[7].mxu1  ;;  %v922_v1 = vmax.f32 %v814_v54, 0.0 }
 0x1cf   : > { %v950_v62 = vadd.f32 %v949_v56, %v948_v51  ;;  %v809_v63 = vadd.f32 %v1793_v37, %v808_v61  ;;  %v920_v4 = vmax.f32 %v806_v57, 0.0 }
 0x1d0   : > { %v958_v0 = vrot.slane %v957_v59, 2  ;;  %v923_v2 = vmax.f32 %v817_v60, 0.0 }
 0x1d1   : > { %v951_v3 = vrot.slane %v950_v62, 2  ;;  %v921_v5 = vmax.f32 %v809_v63, 0.0 }
 0x1d2   : > { %v959_v6 = vadd.f32 %v958_v0, %v957_v59  ;;  %v969_v7 = vadd.f32 %v923_v2, %v922_v1 }
 0x1d3   : > { %v952_v8 = vadd.f32 %v951_v3, %v950_v62  ;;  %v962_v9 = vadd.f32 %v921_v5, %v920_v4  ;;  %v1453_v10 = vpop.f32.mrb[8].mxu1 }
 0x1d4   : > { %v960_v11 = vrot.slane %v959_v6, 1  ;;  %v970_v12 = vrot.slane %v969_v7, 4  ;;  %v830_v13 = vadd.f32 %v1453_v10, %v1793_v37  ;;  %v821_v14 = vpop.f32.mrb[9].mxu1 }
 0x1d5   : > { %v953_v15 = vrot.slane %v952_v8, 1  ;;  %v963_v27 = vrot.slane %v962_v9, 4  ;;  %v822_v16 = vadd.f32 %v1793_v37, %v821_v14  ;;  %v1454_v17 = vpop.f32.mrb[10].mxu1 }
 0x1d6   : > { %v961_v18 = vadd.f32 %v960_v11, %v959_v6  ;;  %v971_v19 = vadd.f32 %v970_v12, %v969_v7  ;;  %v833_v20 = vadd.f32 %v1454_v17, %v1793_v37  ;;  %v824_v21 = vpop.f32.mrb[11].mxu1  ;;  %v926_v28 = vmax.f32 %v830_v13, 0.0 }
 0x1d7   : > { %v954_v22 = vadd.f32 %v953_v15, %v952_v8  ;;  %v964_v23 = vadd.f32 %v963_v27, %v962_v9  ;;  %v825_v24 = vadd.f32 %v1793_v37, %v824_v21  ;;  %v924_v32 = vmax.f32 %v822_v16, 0.0 }
 0x1d8   : > { %v1061_v25 = vmul.f32 0.0625, %v961_v18  ;;  %v972_v26 = vrot.slane %v971_v19, 2  ;;  %v927_v29 = vmax.f32 %v833_v20, 0.0 }
 0x1d9   : > { %v1060_v30 = vmul.f32 0.0625, %v954_v22  ;;  %v965_v31 = vrot.slane %v964_v23, 2  ;;  %v925_v33 = vmax.f32 %v825_v24, 0.0 }
 0x1da   : > { %v973_v34 = vadd.f32 %v972_v26, %v971_v19  ;;  %v983_v35 = vadd.f32 %v927_v29, %v926_v28 }
 0x1db   : > { %v1116_v36 = vsel %vm1115_vm1, %v1061_v25, %v1060_v30  ;;  %v966_v38 = vadd.f32 %v965_v31, %v964_v23  ;;  %v976_v39 = vadd.f32 %v925_v33, %v924_v32  ;;  %v1457_v40 = vpop.f32.mrb[12].mxu1 }
 0x1dc   : > { %v974_v41 = vrot.slane %v973_v34, 1  ;;  %v984_v42 = vrot.slane %v983_v35, 4  ;;  %v846_v43 = vadd.f32 %v1457_v40, %v1793_v37  ;;  %v837_v44 = vpop.f32.mrb[13].mxu1 }
 0x1dd   : > { %v967_v45 = vrot.slane %v966_v38, 1  ;;  %v977_v46 = vrot.slane %v976_v39, 4  ;;  %v838_v47 = vadd.f32 %v1793_v37, %v837_v44  ;;  %v1458_v48 = vpop.f32.mrb[14].mxu1 }
 0x1de   : > { %v975_v49 = vadd.f32 %v974_v41, %v973_v34  ;;  %v985_v50 = vadd.f32 %v984_v42, %v983_v35  ;;  %v849_v51 = vadd.f32 %v1458_v48, %v1793_v37  ;;  %v840_v52 = vpop.f32.mrb[15].mxu1  ;;  %v930_v57 = vmax.f32 %v846_v43, 0.0 }
 0x1df   : > { %v968_v53 = vadd.f32 %v967_v45, %v966_v38  ;;  %v978_v54 = vadd.f32 %v977_v46, %v976_v39  ;;  %v841_v55 = vadd.f32 %v1793_v37, %v840_v52  ;;  %v928_v61 = vmax.f32 %v838_v47, 0.0 }
 0x1e0   : > { %v986_v56 = vrot.slane %v985_v50, 2  ;;  %v931_v58 = vmax.f32 %v849_v51, 0.0  ;;  %v1063_v63 = vmul.f32 0.0625, %v975_v49 }
 0x1e1   : > { %v1062_v59 = vmul.f32 0.0625, %v968_v53  ;;  %v979_v60 = vrot.slane %v978_v54, 2  ;;  %v929_v62 = vmax.f32 %v841_v55, 0.0 }
 0x1e2   : > { %v987_v0 = vadd.f32 %v986_v56, %v985_v50  ;;  %v997_v1 = vadd.f32 %v931_v58, %v930_v57 }
 0x1e3   : > { %v980_v2 = vadd.f32 %v979_v60, %v978_v54  ;;  %v990_v3 = vadd.f32 %v929_v62, %v928_v61  ;;  %v1461_v4 = vpop.f32.mrb[16].mxu1  ;;  %v1118_v5 = vsel %vm1117_vm2, %v1062_v59, %v1116_v36 }
 0x1e4   : > { %v988_v6 = vrot.slane %v987_v0, 1  ;;  %v998_v7 = vrot.slane %v997_v1, 4  ;;  %v862_v8 = vadd.f32 %v1461_v4, %v1793_v37  ;;  %v853_v9 = vpop.f32.mrb[17].mxu1  ;;  %v1120_v10 = vsel %vm1119_vm3, %v1063_v63, %v1118_v5 }
 0x1e5   : > { %v981_v11 = vrot.slane %v980_v2, 1  ;;  %v991_v12 = vrot.slane %v990_v3, 4  ;;  %v854_v13 = vadd.f32 %v1793_v37, %v853_v9  ;;  %v1462_v14 = vpop.f32.mrb[18].mxu1 }
 0x1e6   : > { %v989_v15 = vadd.f32 %v988_v6, %v987_v0  ;;  %v999_v27 = vadd.f32 %v998_v7, %v997_v1  ;;  %v865_v16 = vadd.f32 %v1462_v14, %v1793_v37  ;;  %v856_v17 = vpop.f32.mrb[19].mxu1  ;;  %v934_v22 = vmax.f32 %v862_v8, 0.0 }
 0x1e7   : > { %v982_v18 = vadd.f32 %v981_v11, %v980_v2  ;;  %v992_v19 = vadd.f32 %v991_v12, %v990_v3  ;;  %v857_v20 = vadd.f32 %v1793_v37, %v856_v17  ;;  %v932_v26 = vmax.f32 %v854_v13, 0.0 }
 0x1e8   : > { %v1000_v21 = vrot.slane %v999_v27, 2  ;;  %v935_v23 = vmax.f32 %v865_v16, 0.0  ;;  %v1065_v29 = vmul.f32 0.0625, %v989_v15 }
 0x1e9   : > { %v1064_v24 = vmul.f32 0.0625, %v982_v18  ;;  %v993_v25 = vrot.slane %v992_v19, 2  ;;  %v933_v28 = vmax.f32 %v857_v20, 0.0 }
 0x1ea   : > { %v1001_v30 = vadd.f32 %v1000_v21, %v999_v27  ;;  %v1011_v31 = vadd.f32 %v935_v23, %v934_v22 }
 0x1eb   : > { %v994_v32 = vadd.f32 %v993_v25, %v992_v19  ;;  %v1004_v33 = vadd.f32 %v933_v28, %v932_v26  ;;  %v1465_v34 = vpop.f32.mrb[20].mxu1  ;;  %v1122_v35 = vsel %vm1121_vm4, %v1064_v24, %v1120_v10 }
 0x1ec   : > { %v1012_v36 = vrot.slane %v1011_v31, 4  ;;  %v878_v38 = vadd.f32 %v1465_v34, %v1793_v37  ;;  %v869_v39 = vpop.f32.mrb[21].mxu1  ;;  %v1002_v40 = vrot.slane %v1001_v30, 1  ;;  %v1124_v41 = vsel %vm1123_vm5, %v1065_v29, %v1122_v35 }
 0x1ed   : > { %v995_v42 = vrot.slane %v994_v32, 1  ;;  %v1005_v43 = vrot.slane %v1004_v33, 4  ;;  %v870_v44 = vadd.f32 %v1793_v37, %v869_v39  ;;  %v1466_v45 = vpop.f32.mrb[22].mxu1 }
 0x1ee   : > { %v1013_v46 = vadd.f32 %v1012_v36, %v1011_v31  ;;  %v881_v47 = vadd.f32 %v1466_v45, %v1793_v37  ;;  %v872_v48 = vpop.f32.mrb[23].mxu1  ;;  %v1003_v49 = vadd.f32 %v1002_v40, %v1001_v30  ;;  %v938_v54 = vmax.f32 %v878_v38, 0.0 }
 0x1ef   : > { %v1006_v50 = vadd.f32 %v1005_v43, %v1004_v33  ;;  %v873_v51 = vadd.f32 %v1793_v37, %v872_v48  ;;  %v996_v52 = vadd.f32 %v995_v42, %v994_v32  ;;  %v936_v57 = vmax.f32 %v870_v44, 0.0 }
 0x1f0   : > { %v1014_v53 = vrot.slane %v1013_v46, 2  ;;  %v939_v55 = vmax.f32 %v881_v47, 0.0  ;;  %v1067_v62 = vmul.f32 0.0625, %v1003_v49 }
 0x1f1   : > { %v1007_v56 = vrot.slane %v1006_v50, 2  ;;  %v937_v58 = vmax.f32 %v873_v51, 0.0  ;;  %v1066_v59 = vmul.f32 0.0625, %v996_v52 }
 0x1f2   : > { %v1015_v60 = vadd.f32 %v1014_v53, %v1013_v46  ;;  %v1025_v61 = vadd.f32 %v939_v55, %v938_v54 }
 0x1f3   : > { %v1008_v63 = vadd.f32 %v1007_v56, %v1006_v50  ;;  %v1018_v0 = vadd.f32 %v937_v58, %v936_v57  ;;  %v1469_v1 = vpop.f32.mrb[24].mxu1  ;;  %v1126_v2 = vsel %vm1125_vm6, %v1066_v59, %v1124_v41 }
 0x1f4   : > { %v1016_v3 = vrot.slane %v1015_v60, 1  ;;  %v1026_v4 = vrot.slane %v1025_v61, 4  ;;  %v894_v5 = vadd.f32 %v1469_v1, %v1793_v37  ;;  %v885_v6 = vpop.f32.mrb[25].mxu1  ;;  %v1128_v7 = vsel %vm1127_vm7, %v1067_v62, %v1126_v2 }
 0x1f5   : > { %v1009_v8 = vrot.slane %v1008_v63, 1  ;;  %v1019_v9 = vrot.slane %v1018_v0, 4  ;;  %v886_v10 = vadd.f32 %v1793_v37, %v885_v6  ;;  %v1470_v11 = vpop.f32.mrb[26].mxu1  ;;  %1507 = vmatprep.mubr.f32.mxu0 %v1128_v7 }
 0x1f6   : > { %v1017_v12 = vadd.f32 %v1016_v3, %v1015_v60  ;;  %v1027_v13 = vadd.f32 %v1026_v4, %v1025_v61  ;;  %v897_v14 = vadd.f32 %v1470_v11, %v1793_v37  ;;  %v888_v15 = vpop.f32.mrb[27].mxu1  ;;  %v942_v20 = vmax.f32 %v894_v5, 0.0 }
 0x1f7   : > { %v1010_v27 = vadd.f32 %v1009_v8, %v1008_v63  ;;  %v1020_v16 = vadd.f32 %v1019_v9, %v1018_v0  ;;  %v889_v17 = vadd.f32 %v1793_v37, %v888_v15  ;;  %v940_v24 = vmax.f32 %v886_v10, 0.0 }
 0x1f8   : > { %v1069_v18 = vmul.f32 0.0625, %v1017_v12  ;;  %v1028_v19 = vrot.slane %v1027_v13, 2  ;;  %v943_v21 = vmax.f32 %v897_v14, 0.0 }
 0x1f9   : > { %v1068_v22 = vmul.f32 0.0625, %v1010_v27  ;;  %v1021_v23 = vrot.slane %v1020_v16, 2  ;;  %v941_v25 = vmax.f32 %v889_v17, 0.0 }
 0x1fa   : > { %v1029_v26 = vadd.f32 %v1028_v19, %v1027_v13  ;;  %v1039_v28 = vadd.f32 %v943_v21, %v942_v20  ;;  %v1325_v21 = vld [vmem:[%s1858_s6] ss:$0 sm:$0xff] }
 0x1fb   : > { %v1129_v29 = vsel %vm1115_vm1, %v1069_v18, %v1068_v22  ;;  %v1022_v30 = vadd.f32 %v1021_v23, %v1020_v16  ;;  %v1032_v31 = vadd.f32 %v941_v25, %v940_v24  ;;  %v1473_v32 = vpop.f32.mrb[28].mxu1 }
 0x1fc   : > { %v1030_v33 = vrot.slane %v1029_v26, 1  ;;  %v1040_v34 = vrot.slane %v1039_v28, 4  ;;  %v910_v35 = vadd.f32 %v1473_v32, %v1793_v37  ;;  %v901_v36 = vpop.f32.mrb[29].mxu1 }
 0x1fd   : > { %v1023_v38 = vrot.slane %v1022_v30, 1  ;;  %v1033_v39 = vrot.slane %v1032_v31, 4  ;;  %v902_v40 = vadd.f32 %v1793_v37, %v901_v36  ;;  %v1474_v41 = vpop.f32.mrb[30].mxu1 }
 0x1fe   : > { %v1031_v42 = vadd.f32 %v1030_v33, %v1029_v26  ;;  %v1041_v43 = vadd.f32 %v1040_v34, %v1039_v28  ;;  %v913_v44 = vadd.f32 %v1474_v41, %v1793_v37  ;;  %v904_v45 = vpop.f32.mrb[31].mxu1  ;;  %v946_v50 = vmax.f32 %v910_v35, 0.0 }
 0x1ff   : > { %v1024_v46 = vadd.f32 %v1023_v38, %v1022_v30  ;;  %v1034_v47 = vadd.f32 %v1033_v39, %v1032_v31  ;;  %v905_v48 = vadd.f32 %v1793_v37, %v904_v45  ;;  %v944_v54 = vmax.f32 %v902_v40, 0.0 }
 0x200   : > { %v1042_v49 = vrot.slane %v1041_v43, 2  ;;  %v947_v51 = vmax.f32 %v913_v44, 0.0  ;;  %v1071_v56 = vmul.f32 0.0625, %v1031_v42 }
 0x201   : > { %v1070_v52 = vmul.f32 0.0625, %v1024_v46  ;;  %v1035_v53 = vrot.slane %v1034_v47, 2  ;;  %v945_v55 = vmax.f32 %v905_v48, 0.0 }
 0x202   : > { %v1043_v57 = vadd.f32 %v1042_v49, %v1041_v43  ;;  %v1053_v58 = vadd.f32 %v947_v51, %v946_v50 }
 0x203   : > { %v1130_v59 = vsel %vm1117_vm2, %v1070_v52, %v1129_v29  ;;  %v1036_v60 = vadd.f32 %v1035_v53, %v1034_v47  ;;  %v1046_v61 = vadd.f32 %v945_v55, %v944_v54 }
 0x204   : > { %v1044_v62 = vrot.slane %v1043_v57, 1  ;;  %v1054_v63 = vrot.slane %v1053_v58, 4  ;;  %v1131_v0 = vsel %vm1119_vm3, %v1071_v56, %v1130_v59 }
 0x205   : > { %v1037_v1 = vrot.slane %v1036_v60, 1  ;;  %v1047_v37 = vrot.slane %v1046_v61, 4 }
 0x206   : > { %v1045_v2 = vadd.f32 %v1044_v62, %v1043_v57  ;;  %v1055_v3 = vadd.f32 %v1054_v63, %v1053_v58 }
 0x207   : > { %v1038_v4 = vadd.f32 %v1037_v1, %v1036_v60  ;;  %v1048_v5 = vadd.f32 %v1047_v37, %v1046_v61 }
 0x208   : > { %v1056_v6 = vrot.slane %v1055_v3, 2  ;;  %v1073_v9 = vmul.f32 0.0625, %v1045_v2 }
 0x209   : > { %v1072_v7 = vmul.f32 0.0625, %v1038_v4  ;;  %v1049_v8 = vrot.slane %v1048_v5, 2 }
 0x20a   : > { %v1057_v10 = vadd.f32 %v1056_v6, %v1055_v3 }
 0x20b   : > { %v1050_v11 = vadd.f32 %v1049_v8, %v1048_v5  ;;  %v1132_v12 = vsel %vm1121_vm4, %v1072_v7, %v1131_v0 }
 0x20c   : > { %v1058_v13 = vrot.slane %v1057_v10, 1  ;;  %v1133_v14 = vsel %vm1123_vm5, %v1073_v9, %v1132_v12 }
 0x20d   : > { %v1051_v15 = vrot.slane %v1050_v11, 1 }
 0x20e   : > { %v1059_v27 = vadd.f32 %v1058_v13, %v1057_v10 }
 0x20f   : > { %v1052_v16 = vadd.f32 %v1051_v15, %v1050_v11 }
 0x210   : > { %v1075_v18 = vmul.f32 0.0625, %v1059_v27 }
 0x211   : > { %v1074_v17 = vmul.f32 0.0625, %v1052_v16 }
 0x213   : > { %v1134_v19 = vsel %vm1125_vm6, %v1074_v17, %v1133_v14 }
 0x214   : > { %v1135_v20 = vsel %vm1127_vm7, %v1075_v18, %v1134_v19 }
 0x215   : > { %1508 = vmatmul.mubr.f32.vlgmr.msra.gmra.mrb[32].mxu0 %v1135_v20 }
 0x2e8   : > { %v1509_v22 = vpop.f32.mrb[32].mxu0 }
 0x2e9   : > { %v1204_v23 = vpop.f32.mrb[33].mxu0  ;;  %v1210_v25 = vadd.f32 %v1509_v22, %v1325_v21 }
 0x2ea   : > { %v1205_v24 = vadd.f32 %v1325_v21, %v1204_v23 }
 0x2eb   : > { %1214 = vst [vmem:[%s280_s9 + $0x8] sm:$0xff] %v1210_v25 }
 0x2ec   : > { %1213 = vst [vmem:[%s280_s9] sm:$0xff] %v1205_v24 }
 0x2ed PF: > { %s17_s24 = sadd.s32 1, %s1583_s24  }
 0x2ee   : > { %p14_p5 = scmp.ge.s32.totalorder %s17_s24, 4  }
 0x2f0   :  { %16 = sbr.rel (!%p14_p5) target bundleno = 1 (0x1), region = 78 }

</bundles_post_ra>
